<compile_context>
chip_gen: v7x
topology: tpu7x:2x2x1
jax: 0.10.0
libtpu: 0.0.40
codegen_flags: <defaults>
</compile_context>

<pallas_src>
import functools

import jax
import jax.numpy as jnp
from jax.experimental import pallas as pl
from jax.experimental.pallas import tpu as pltpu


def _ceil_to(n, m):
    return ((n + m - 1) // m) * m


def _make_fused_mlp_kernel(num_layers, n_out):
    """Kernel over refs: (x, w_stack, b_stack, out).

    Hidden layers: MXU matmul + bias + ReLU (VPU).
    Final layer:   MXU matmul + bias + numerically-stable log_softmax over the
                   last axis, with padded lanes masked out of the reduction.
    """

    def kernel(x_ref, w_ref, b_ref, o_ref):
        h = x_ref[...]                                   # (TB, F)
        for i in range(num_layers):
            w = w_ref[i]                                  # (F, F) static view
            b = b_ref[i]                                  # (1, F) static view
            y = jnp.dot(h, w, preferred_element_type=jnp.float32) + b
            if i < num_layers - 1:
                h = jnp.maximum(y, 0.0)                   # ReLU on VPU
            else:
                # Mask padded output lanes so they don't perturb max / sum-exp.
                lane = jax.lax.broadcasted_iota(jnp.int32, y.shape, 1)
                y = jnp.where(lane < n_out, y, -1e30)     # Python literal, not
                                                          # a captured array
                m = jnp.max(y, axis=-1, keepdims=True)    # XLU reduce
                z = y - m
                s = jnp.sum(jnp.exp(z), axis=-1, keepdims=True)  # EUP + XLU
                h = z - jnp.log(s)
        o_ref[...] = h.astype(o_ref.dtype)

    return kernel


def init_mlp_params(key, layers):
    """Deterministic init mirroring PyTorch's default Linear init:
    U(-1/sqrt(fan_in), 1/sqrt(fan_in)) for weight and bias.
    Weights stored as (in_features, out_features) (i.e. W.T)."""
    params = []
    for i in range(len(layers) - 1):
        fan_in, fan_out = layers[i], layers[i + 1]
        key, kw, kb = jax.random.split(key, 3)
        bound = 1.0 / (fan_in ** 0.5)
        w = jax.random.uniform(kw, (fan_in, fan_out), jnp.float32, -bound, bound)
        b = jax.random.uniform(kb, (fan_out,), jnp.float32, -bound, bound)
        params.append((w, b))
    return params


def prepare_mlp_params(params):
    """ONE-TIME padding/packing of parameters (hoisted out of the call path).

    All feature dims are padded to a common lane-aligned width F (multiple of
    128). Zero-padding is exact through Linear+ReLU; the padded output lanes
    are masked inside the kernel before the log-softmax reduction.

    Returns (w_stack, b_stack, n_out):
      w_stack: (L, F, F) float32   b_stack: (L, 1, F) float32
    """
    dims = [params[0][0].shape[0]] + [w.shape[1] for (w, _) in params]
    F = max(_ceil_to(d, 128) for d in dims)
    L = len(params)
    w_stack = jnp.zeros((L, F, F), jnp.float32)
    b_stack = jnp.zeros((L, 1, F), jnp.float32)
    for i, (w, b) in enumerate(params):
        fi, fo = w.shape
        w_stack = w_stack.at[i, :fi, :fo].set(w)
        b_stack = b_stack.at[i, 0, :fo].set(b)
    n_out = params[-1][0].shape[1]
    return w_stack, b_stack, n_out


@functools.partial(jax.jit, static_argnames=("n_out",))
def mlp_forward(x, w_stack, b_stack, *, n_out):
    """Equivalent of MLP.forward: (Linear+ReLU)* hidden layers, then
    Linear + LogSoftmax (last axis) — all in one fused Pallas kernel."""
    batch, in_f = x.shape
    L, F, _ = w_stack.shape

    # Batch padded to sublane multiple of 8; tile it only when it grows.
    batch_p = _ceil_to(max(batch, 8), 8)
    TB = batch_p if batch_p <= 512 else 512
    batch_p = _ceil_to(batch_p, TB)

    # Per-call padding is only on the activation (params are pre-padded).
    xp = jnp.zeros((batch_p, F), jnp.float32).at[:batch, :in_f].set(x)

    kernel = _make_fused_mlp_kernel(L, n_out)

    out_padded = pl.pallas_call(
        kernel,
        out_shape=jax.ShapeDtypeStruct((batch_p, F), jnp.float32),
        grid=(batch_p // TB,),
        in_specs=[
            pl.BlockSpec((TB, F), lambda i: (i, 0)),        # x tile
            pl.BlockSpec((L, F, F), lambda i: (0, 0, 0)),   # weights, resident
            pl.BlockSpec((L, 1, F), lambda i: (0, 0, 0)),   # biases, resident
        ],
        out_specs=pl.BlockSpec((TB, F), lambda i: (i, 0)),
        compiler_params=pltpu.CompilerParams(
            dimension_semantics=("parallel",)),  # shards batch across v7x TCs
    )(xp, w_stack, b_stack)

    return out_padded[:batch, :n_out]


if __name__ == "__main__":
    key = jax.random.PRNGKey(0)
    # MLP(layers=[32, 64, 48, 16]): two hidden Linear+ReLU layers, then
    # Linear + LogSoftmax output layer.
    layer_sizes = [32, 64, 48, 16]
    batch = 8

    key, kx = jax.random.split(key)
    x = jax.random.normal(kx, (batch, layer_sizes[0]), jnp.float32)
    params = init_mlp_params(key, layer_sizes)

    # One-time prepare step (padding hoisted out of the per-call path).
    w_stack, b_stack, n_out = prepare_mlp_params(params)

    out = mlp_forward(x, w_stack, b_stack, n_out=n_out)
    out = jax.block_until_ready(out)

    # sanity: log_softmax rows should sum (in prob space) to ~1
    row_sums = jnp.sum(jnp.exp(out), axis=-1)
    assert out.shape == (batch, layer_sizes[-1])
    assert bool(jnp.all(jnp.abs(row_sums - 1.0) < 1e-4))

    # cross-check against a pure-JAX reference of the same math
    ref = x
    for i, (w, b) in enumerate(params):
        ref = ref @ w + b
        if i < len(params) - 1:
            ref = jnp.maximum(ref, 0.0)
        else:
            ref = jax.nn.log_softmax(ref, axis=-1)
    assert bool(jnp.all(jnp.abs(out - ref) < 1e-4))

    print("KERNEL_OK")
</pallas_src>

<mosaic_0001>
module attributes {stable_mosaic.version = 11 : i64} {
  func.func @kernel(%arg0: i32, %arg1: memref<8x128xf32, #tpu.memory_space<vmem>>, %arg2: memref<3x128x128xf32, #tpu.memory_space<vmem>>, %arg3: memref<3x1x128xf32, #tpu.memory_space<vmem>>, %arg4: memref<8x128xf32, #tpu.memory_space<vmem>>) attributes {dimension_semantics = [#tpu.dimension_semantics<parallel>], iteration_bounds = array<i64: 1>, scalar_prefetch = 0 : i64, scratch_operands = 0 : i64, tpu.core_type = #tpu.core_type<tc>, window_params = [{transform_indices = @transform_0, window_bounds = array<i64: 8, 128>}, {pipeline_mode = #tpu.pipeline_mode<synchronous>, transform_indices = @transform_1, window_bounds = array<i64: 3, 128, 128>}, {pipeline_mode = #tpu.pipeline_mode<synchronous>, transform_indices = @transform_2, window_bounds = array<i64: 3, 1, 128>}, {transform_indices = @transform_3, window_bounds = array<i64: 8, 128>}]} {
    %c0 = arith.constant 0 : index
    %c0_0 = arith.constant 0 : index
    %0 = vector.load %arg1[%c0, %c0_0] : memref<8x128xf32, #tpu.memory_space<vmem>>, vector<8x128xf32>
    %c0_1 = arith.constant 0 : index
    %c0_2 = arith.constant 0 : index
    %c0_3 = arith.constant 0 : index
    %1 = vector.load %arg2[%c0_1, %c0_2, %c0_3] : memref<3x128x128xf32, #tpu.memory_space<vmem>>, vector<1x128x128xf32>
    %2 = vector.shape_cast %1 : vector<1x128x128xf32> to vector<128x128xf32>
    %c0_4 = arith.constant 0 : index
    %c0_5 = arith.constant 0 : index
    %c0_6 = arith.constant 0 : index
    %3 = vector.load %arg3[%c0_4, %c0_5, %c0_6] : memref<3x1x128xf32, #tpu.memory_space<vmem>>, vector<1x1x128xf32>
    %4 = vector.shape_cast %3 : vector<1x1x128xf32> to vector<1x128xf32>
    %cst = arith.constant dense<0.000000e+00> : vector<8x128xf32>
    %5 = tpu.matmul %0, %2, %cst {dimension_numbers = #tpu.dot_dimension_numbers<[1], [0], [0], [1], [0, 0, 1, 1], [], []>} : vector<8x128xf32>, vector<128x128xf32>, vector<8x128xf32> -> vector<8x128xf32>
    %6 = vector.broadcast %4 : vector<1x128xf32> to vector<8x128xf32>
    %7 = arith.addf %5, %6 : vector<8x128xf32>
    %cst_7 = arith.constant 0.000000e+00 : f32
    %8 = vector.broadcast %cst_7 : f32 to vector<8x128xf32>
    %9 = arith.maximumf %7, %8 : vector<8x128xf32>
    %c1 = arith.constant 1 : index
    %c0_8 = arith.constant 0 : index
    %c0_9 = arith.constant 0 : index
    %10 = vector.load %arg2[%c1, %c0_8, %c0_9] : memref<3x128x128xf32, #tpu.memory_space<vmem>>, vector<1x128x128xf32>
    %11 = vector.shape_cast %10 : vector<1x128x128xf32> to vector<128x128xf32>
    %c1_10 = arith.constant 1 : index
    %c0_11 = arith.constant 0 : index
    %c0_12 = arith.constant 0 : index
    %12 = vector.load %arg3[%c1_10, %c0_11, %c0_12] : memref<3x1x128xf32, #tpu.memory_space<vmem>>, vector<1x1x128xf32>
    %13 = vector.shape_cast %12 : vector<1x1x128xf32> to vector<1x128xf32>
    %cst_13 = arith.constant dense<0.000000e+00> : vector<8x128xf32>
    %14 = tpu.matmul %9, %11, %cst_13 {dimension_numbers = #tpu.dot_dimension_numbers<[1], [0], [0], [1], [0, 0, 1, 1], [], []>} : vector<8x128xf32>, vector<128x128xf32>, vector<8x128xf32> -> vector<8x128xf32>
    %15 = vector.broadcast %13 : vector<1x128xf32> to vector<8x128xf32>
    %16 = arith.addf %14, %15 : vector<8x128xf32>
    %cst_14 = arith.constant 0.000000e+00 : f32
    %17 = vector.broadcast %cst_14 : f32 to vector<8x128xf32>
    %18 = arith.maximumf %16, %17 : vector<8x128xf32>
    %c2 = arith.constant 2 : index
    %c0_15 = arith.constant 0 : index
    %c0_16 = arith.constant 0 : index
    %19 = vector.load %arg2[%c2, %c0_15, %c0_16] : memref<3x128x128xf32, #tpu.memory_space<vmem>>, vector<1x128x128xf32>
    %20 = vector.shape_cast %19 : vector<1x128x128xf32> to vector<128x128xf32>
    %c2_17 = arith.constant 2 : index
    %c0_18 = arith.constant 0 : index
    %c0_19 = arith.constant 0 : index
    %21 = vector.load %arg3[%c2_17, %c0_18, %c0_19] : memref<3x1x128xf32, #tpu.memory_space<vmem>>, vector<1x1x128xf32>
    %22 = vector.shape_cast %21 : vector<1x1x128xf32> to vector<1x128xf32>
    %cst_20 = arith.constant dense<0.000000e+00> : vector<8x128xf32>
    %23 = tpu.matmul %18, %20, %cst_20 {dimension_numbers = #tpu.dot_dimension_numbers<[1], [0], [0], [1], [0, 0, 1, 1], [], []>} : vector<8x128xf32>, vector<128x128xf32>, vector<8x128xf32> -> vector<8x128xf32>
    %24 = vector.broadcast %22 : vector<1x128xf32> to vector<8x128xf32>
    %25 = arith.addf %23, %24 : vector<8x128xf32>
    %26 = tpu.iota {dimensions = array<i32: 1>} : vector<8x128xi32>
    %c16_i32 = arith.constant 16 : i32
    %27 = vector.broadcast %c16_i32 : i32 to vector<8x128xi32>
    %28 = arith.cmpi slt, %26, %27 : vector<8x128xi32>
    %cst_21 = arith.constant -1.000000e+30 : f32
    %29 = vector.broadcast %cst_21 : f32 to vector<8x128xf32>
    %30 = arith.select %28, %25, %29 : vector<8x128xi1>, vector<8x128xf32>
    %cst_22 = arith.constant dense<0xFF800000> : vector<8xf32>
    %31 = vector.multi_reduction <maximumf>, %30, %cst_22 [1] : vector<8x128xf32> to vector<8xf32>
    %32 = vector.shape_cast %31 : vector<8xf32> to vector<8x1xf32>
    %33 = vector.broadcast %32 : vector<8x1xf32> to vector<8x128xf32>
    %34 = arith.subf %30, %33 : vector<8x128xf32>
    %35 = math.exp %34 : vector<8x128xf32>
    %cst_23 = arith.constant dense<0.000000e+00> : vector<8xf32>
    %36 = vector.multi_reduction <add>, %35, %cst_23 [1] : vector<8x128xf32> to vector<8xf32>
    %37 = vector.shape_cast %36 : vector<8xf32> to vector<8x1xf32>
    %38 = math.log %37 : vector<8x1xf32>
    %39 = vector.broadcast %38 : vector<8x1xf32> to vector<8x128xf32>
    %40 = arith.subf %34, %39 : vector<8x128xf32>
    %c0_24 = arith.constant 0 : index
    %c0_25 = arith.constant 0 : index
    %41 = vector.load %arg4[%c0_24, %c0_25] : memref<8x128xf32, #tpu.memory_space<vmem>>, vector<8x128xf32>
    tpu.vector_store %arg4[%c0_24, %c0_25], %40 {strides = array<i32>} : memref<8x128xf32, #tpu.memory_space<vmem>>, vector<8x128xf32>,
    return
  }
  func.func @transform_0(%arg0: i32) -> (i32, i32) {
    %c0_i32 = arith.constant 0 : i32
    %c0_i32_0 = arith.constant 0 : i32
    return %arg0, %c0_i32 : i32, i32
  }
  func.func @transform_1(%arg0: i32) -> (i32, i32, i32) {
    %c0_i32 = arith.constant 0 : i32
    %c0_i32_0 = arith.constant 0 : i32
    %c0_i32_1 = arith.constant 0 : i32
    %c0_i32_2 = arith.constant 0 : i32
    return %c0_i32, %c0_i32_0, %c0_i32_1 : i32, i32, i32
  }
  func.func @transform_2(%arg0: i32) -> (i32, i32, i32) {
    %c0_i32 = arith.constant 0 : i32
    %c0_i32_0 = arith.constant 0 : i32
    %c0_i32_1 = arith.constant 0 : i32
    %c0_i32_2 = arith.constant 0 : i32
    return %c0_i32, %c0_i32_0, %c0_i32_1 : i32, i32, i32
  }
  func.func @transform_3(%arg0: i32) -> (i32, i32) {
    %c0_i32 = arith.constant 0 : i32
    %c0_i32_0 = arith.constant 0 : i32
    return %arg0, %c0_i32 : i32, i32
  }
}

</mosaic_0001>

<bundles_post_ra>
// kernel: mlp_forward.1
= control target key start
LH: loop header
LB: loop body
LE: loop exit
PB: predicated region body
PF: predicated region fallthrough
CT: control target
= control target key end

     0   :  { %8 = vsyncpa [#allocation3], 0  ;;  %s730_s0 = inlined_call_operand.vmem [shape: f32[8,128], index: 0, kind: input, shape index: {}]   ;;  %s731_s1 = inlined_call_operand.hbm [shape: f32[3,128,128], index: 1, kind: input, shape index: {}]   ;;  %s732_s2 = inlined_call_operand.vmem [shape: f32[3,1,128], index: 2, kind: input, shape index: {}]   ;;  %s733_s3 = inlined_call_operand.hbm [shape: f32[8,128], index: 3, kind: output, shape index: {}]  }
   0x1   :  { %9 = vsyncpa [#allocation4], 0  ;;  %s637_s12 = smov [#allocation2]   ;;  %s589_s16 = scalar_lea.hbm %s731_s1, 6144 }
   0x2   :  { %s17_s13 = sshll.u32 %s637_s12, 4  ;;  %p590_p0 = scmp.ne.s32.totalorder %s731_s1, %s589_s16  ;;  %s18_s13 = int_to_ptr.vmem [resolvable:$true] %s17_s13 }
   0x3   :  { %p593_p1 = scmp.lt.u32.totalorder %s589_s16, %s731_s1 }
   0x5   :  { %p595_p2 = pnand %p593_p1, %p590_p0 }
   0x7   :  { %598 = shalt.err (!%p595_p2)
}
   0x8   :  { %s599_s21 = scalar_lea.vmem %s18_s13, 6144  ;;  %p604_p4 = scmp.lt.s32.totalorder %s18_s13, %s18_s13 }
   0x9   :  { %p600_p3 = scmp.ne.s32.totalorder %s18_s13, %s599_s21  ;;  %p605_p5 = scmp.lt.s32.totalorder %s599_s21, %s599_s21 }
   0xb   :  { %p606_p6 = por %p605_p5, %p604_p4 }
   0xd   :  { %p607_p7 = pnand %p606_p6, %p600_p3 }
   0xf   :  { %610 = shalt.err (!%p607_p7)
}
  0x10   :  { %s638_s22 = smov 128   ;;  %s639_s23 = smov 8  }
  0x11   :  { %23 = dma.hbm_to_vmem [thread:$0]  %s731_s1, 6144, %s18_s13, [#allocation3], %s638_s22, %s638_s22, %s639_s23  }
  0x12   :  { %633 = dma.done.wait [#allocation3], 6144  }
  0x13   :  { %634 = vsyncadd [#allocation3], 4294961152  ;;  %v640_v0 = vmov 0.0|0.0   ;;  %vm641_vm0 = vmmov 0   ;;  %v642_v1 = vmov 0.0   ;;  %v30_v2 = vld [vmem:[#allocation2] sm:$0xff] }
  0x14   :  { %506 = vmatprep.subr.bf16.mxu0 %v640_v0  ;;  %433 = vmatprep.mubr.msk.f32.mxu0 %vm641_vm0, %v642_v1  ;;  %v31_v3 = vld [vmem:[#allocation2 + $0x8] sm:$0xff]  ;;  %v32_v4 = vld [vmem:[#allocation2 + $0x10] sm:$0xff]  ;;  %v33_v6 = vld [vmem:[#allocation2 + $0x18] sm:$0xff]  ;;  %s643_s5 = smov [#allocation5]  }
  0x15   :  { %530 = vmatprep.subr.bf16.mxu1 %v640_v0  ;;  %468 = vmatprep.mubr.msk.f32.mxu1 %vm641_vm0, %v642_v1  ;;  %v507_v5 = vpack.c.bf16 %v31_v3, %v30_v2  ;;  %v510_v7 = vpack.c.bf16 %v33_v6, %v32_v4  ;;  %v34_v8 = vld [vmem:[#allocation2 + $0x20] sm:$0xff]  ;;  %v35_v9 = vld [vmem:[#allocation2 + $0x28] sm:$0xff]  ;;  %v127_v12 = vld [vmem:[#allocation2 + $0x90] sm:$0xff]  ;;  %s336_s6 = sshll.u32 %s643_s5, 4  ;;  %s337_s6 = int_to_ptr.vmem [resolvable:$true] %s336_s6 }
  0x16   :  { %v125_v10 = vld [vmem:[#allocation2 + $0x80] sm:$0xff]  ;;  %v126_v11 = vld [vmem:[#allocation2 + $0x88] sm:$0xff]  ;;  %v128_v13 = vld [vmem:[#allocation2 + $0x98] sm:$0xff]  ;;  %v513_v14 = vpack.c.bf16 %v35_v9, %v34_v8  ;;  %p616_p9 = scmp.lt.s32.totalorder %s337_s6, %s337_s6 }
  0x17   :  { %508 = vmatpush3.bf16.msra.mxu0 %v507_v5  ;;  %v531_v15 = vpack.c.bf16 %v126_v11, %v125_v10  ;;  %v36_v16 = vld [vmem:[#allocation2 + $0x30] sm:$0xff]  ;;  %v37_v17 = vld [vmem:[#allocation2 + $0x38] sm:$0xff]  ;;  %v534_v18 = vpack.c.bf16 %v128_v13, %v127_v12  ;;  %v129_v19 = vld [vmem:[#allocation2 + $0xa0] sm:$0xff] }
  0x18   :  { %509 = vmatprep.subr.bf16.mxu0 %v640_v0  ;;  %v130_v20 = vld [vmem:[#allocation2 + $0xa8] sm:$0xff]  ;;  %v516_v21 = vpack.c.bf16 %v37_v17, %v36_v16  ;;  %v38_v22 = vld [vmem:[#allocation2 + $0x40] sm:$0xff]  ;;  %v131_v25 = vld [vmem:[#allocation2 + $0xb0] sm:$0xff] }
  0x19   :  { %532 = vmatpush3.bf16.msra.mxu1 %v531_v15  ;;  %v39_v23 = vld [vmem:[#allocation2 + $0x48] sm:$0xff]  ;;  %v537_v24 = vpack.c.bf16 %v130_v20, %v129_v19  ;;  %v132_v26 = vld [vmem:[#allocation2 + $0xb8] sm:$0xff]  ;;  %v40_v28 = vld [vmem:[#allocation2 + $0x50] sm:$0xff] }
  0x1a   :  { %533 = vmatprep.subr.bf16.mxu1 %v640_v0  ;;  %v519_v27 = vpack.c.bf16 %v39_v23, %v38_v22  ;;  %v41_v29 = vld [vmem:[#allocation2 + $0x58] sm:$0xff]  ;;  %v540_v30 = vpack.c.bf16 %v132_v26, %v131_v25  ;;  %v133_v31 = vld [vmem:[#allocation2 + $0xc0] sm:$0xff]  ;;  %v134_v32 = vld [vmem:[#allocation2 + $0xc8] sm:$0xff] }
  0x1b   :  { %511 = vmatpush3.bf16.msra.mxu0 %v510_v7  ;;  %v522_v33 = vpack.c.bf16 %v41_v29, %v40_v28  ;;  %v42_v34 = vld [vmem:[#allocation2 + $0x60] sm:$0xff]  ;;  %v43_v35 = vld [vmem:[#allocation2 + $0x68] sm:$0xff]  ;;  %v543_v36 = vpack.c.bf16 %v134_v32, %v133_v31  ;;  %v135_v37 = vld [vmem:[#allocation2 + $0xd0] sm:$0xff] }
  0x1c   :  { %512 = vmatprep.subr.bf16.mxu0 %v640_v0  ;;  %v136_v38 = vld [vmem:[#allocation2 + $0xd8] sm:$0xff]  ;;  %v525_v39 = vpack.c.bf16 %v43_v35, %v42_v34  ;;  %v44_v40 = vld [vmem:[#allocation2 + $0x70] sm:$0xff]  ;;  %v137_v43 = vld [vmem:[#allocation2 + $0xe0] sm:$0xff] }
  0x1d   :  { %535 = vmatpush3.bf16.msra.mxu1 %v534_v18  ;;  %v45_v41 = vld [vmem:[#allocation2 + $0x78] sm:$0xff]  ;;  %v546_v42 = vpack.c.bf16 %v136_v38, %v135_v37  ;;  %v138_v44 = vld [vmem:[#allocation2 + $0xe8] sm:$0xff]  ;;  %v29_v47 = vld [vmem:[%s730_s0] sm:$0xff] }
  0x1e   :  { %536 = vmatprep.subr.bf16.mxu1 %v640_v0  ;;  %v528_v45 = vpack.c.bf16 %v45_v41, %v44_v40  ;;  %v549_v46 = vpack.c.bf16 %v138_v44, %v137_v43  ;;  %v139_v48 = vld [vmem:[#allocation2 + $0xf0] sm:$0xff]  ;;  %v140_v49 = vld [vmem:[#allocation2 + $0xf8] sm:$0xff]  ;;  %v221_v51 = vld [vmem:[#allocation2 + $0x100] sm:$0xff] }
  0x1f   :  { %514 = vmatpush3.bf16.msra.mxu0 %v513_v14  ;;  %v552_v50 = vpack.c.bf16 %v140_v49, %v139_v48  ;;  %v222_v52 = vld [vmem:[#allocation2 + $0x108] sm:$0xff]  ;;  %v223_v53 = vld [vmem:[#allocation2 + $0x110] sm:$0xff]  ;;  %v224_v55 = vld [vmem:[#allocation2 + $0x118] sm:$0xff] }
  0x20   :  { %515 = vmatprep.subr.bf16.mxu0 %v640_v0  ;;  %v555_v54 = vpack.c.bf16 %v222_v52, %v221_v51  ;;  %v558_v56 = vpack.c.bf16 %v224_v55, %v223_v53  ;;  %v225_v57 = vld [vmem:[#allocation2 + $0x120] sm:$0xff]  ;;  %v226_v58 = vld [vmem:[#allocation2 + $0x128] sm:$0xff]  ;;  %v227_v60 = vld [vmem:[#allocation2 + $0x130] sm:$0xff] }
  0x21   :  { %538 = vmatpush3.bf16.msra.mxu1 %v537_v24  ;;  %v561_v59 = vpack.c.bf16 %v226_v58, %v225_v57  ;;  %v228_v61 = vld [vmem:[#allocation2 + $0x138] sm:$0xff]  ;;  %v229_v63 = vld [vmem:[#allocation2 + $0x140] sm:$0xff]  ;;  %v231_v3 = vld [vmem:[#allocation2 + $0x150] sm:$0xff] }
  0x22   :  { %539 = vmatprep.subr.bf16.mxu1 %v640_v0  ;;  %v564_v62 = vpack.c.bf16 %v228_v61, %v227_v60  ;;  %v232_v4 = vld [vmem:[#allocation2 + $0x158] sm:$0xff]  ;;  %v233_v6 = vld [vmem:[#allocation2 + $0x160] sm:$0xff]  ;;  %v234_v7 = vld [vmem:[#allocation2 + $0x168] sm:$0xff] }
  0x23   :  { %517 = vmatpush3.bf16.msra.mxu0 %v516_v21  ;;  %v570_v5 = vpack.c.bf16 %v232_v4, %v231_v3  ;;  %v573_v8 = vpack.c.bf16 %v234_v7, %v233_v6  ;;  %v345_v9 = vld [vmem:[%s732_s2] ss:$0 sm:$0xff]  ;;  %v235_v14 = vld [vmem:[#allocation2 + $0x170] sm:$0xff]  ;;  %v236_v15 = vld [vmem:[#allocation2 + $0x178] sm:$0xff]  ;;  %v315_v21 = vlaneseq }
  0x24   :  { %518 = vmatprep.subr.bf16.mxu0 %v640_v0  ;;  %v576_v16 = vpack.c.bf16 %v236_v15, %v235_v14  ;;  %v347_v17 = vld [vmem:[%s732_s2 + $0x1] ss:$0 sm:$0xff]  ;;  %v349_v23 = vld [vmem:[%s732_s2 + $0x2] ss:$0 sm:$0xff]  ;;  %s611_s2 = scalar_lea.vmem %s337_s6, 128 }
  0x25   :  { %541 = vmatpush3.bf16.msra.mxu1 %v540_v30  ;;  %v316_v22 = vand.u32 127, %v315_v21  ;;  %p612_p8 = scmp.ne.s32.totalorder %s337_s6, %s611_s2  ;;  %p617_p10 = scmp.lt.s32.totalorder %s611_s2, %s611_s2 }
  0x26   :  { %542 = vmatprep.subr.bf16.mxu1 %v640_v0 }
  0x27   :  { %520 = vmatpush3.bf16.msra.mxu0 %v519_v27  ;;  %vm317_vm1 = vcmp.lt.s32.totalorder %v316_v22, 16  ;;  %p618_p11 = por %p617_p10, %p616_p9 }
  0x28   :  { %521 = vmatprep.subr.bf16.mxu0 %v640_v0 }
  0x29   :  { %544 = vmatpush3.bf16.msra.mxu1 %v543_v36  ;;  %p619_p12 = pnand %p618_p11, %p612_p8 }
  0x2a   :  { %545 = vmatprep.subr.bf16.mxu1 %v640_v0 }
  0x2b   :  { %523 = vmatpush3.bf16.msra.mxu0 %v522_v33 }
  0x2c   :  { %524 = vmatprep.subr.bf16.mxu0 %v640_v0 }
  0x2d   :  { %547 = vmatpush3.bf16.msra.mxu1 %v546_v42 }
  0x2e   :  { %548 = vmatprep.subr.bf16.mxu1 %v640_v0 }
  0x2f   :  { %526 = vmatpush3.bf16.msra.mxu0 %v525_v39 }
  0x30   :  { %527 = vmatprep.subr.bf16.mxu0 %v640_v0 }
  0x31   :  { %550 = vmatpush3.bf16.msra.mxu1 %v549_v46 }
  0x32   :  { %551 = vmatprep.subr.bf16.mxu1 %v640_v0 }
  0x33   :  { %529 = vmatpush3.bf16.msra.mxu0 %v528_v45 }
  0x34   :  { %554 = vmatprep.subr.bf16.mxu0 %v640_v0 }
  0x35   :  { %553 = vmatpush3.bf16.msra.mxu1 %v552_v50 }
  0x36   :  { %434 = vmatmul.mubr.f32.vlgmr.msra.gmra.mrb[0].mxu0 %v29_v47 }
  0x37   :  { %503 = vmatprep.mubr.msk.f32.mxu0 %vm641_vm0, %v642_v1  ;;  %556 = vmatpush3.bf16.msra.mxu0 %v555_v54  ;;  %v230_v1 = vld [vmem:[#allocation2 + $0x148] sm:$0xff] }
  0x38   :  { %557 = vmatprep.subr.bf16.mxu0 %v640_v0  ;;  %v567_v2 = vpack.c.bf16 %v230_v1, %v229_v63 }
  0x3b   :  { %559 = vmatpush3.bf16.msra.mxu0 %v558_v56 }
  0x3c   :  { %560 = vmatprep.subr.bf16.mxu0 %v640_v0 }
  0x3f   :  { %562 = vmatpush3.bf16.msra.mxu0 %v561_v59 }
  0x40   :  { %563 = vmatprep.subr.bf16.mxu0 %v640_v0 }
  0x43   :  { %565 = vmatpush3.bf16.msra.mxu0 %v564_v62 }
  0x44   :  { %566 = vmatprep.subr.bf16.mxu0 %v640_v0 }
  0x47   :  { %568 = vmatpush3.bf16.msra.mxu0 %v567_v2 }
  0x48   :  { %569 = vmatprep.subr.bf16.mxu0 %v640_v0 }
  0x4b   :  { %571 = vmatpush3.bf16.msra.mxu0 %v570_v5 }
  0x4c   :  { %572 = vmatprep.subr.bf16.mxu0 %v640_v0 }
  0x4f   :  { %574 = vmatpush3.bf16.msra.mxu0 %v573_v8 }
  0x50   :  { %575 = vmatprep.subr.bf16.mxu0 %v640_v0 }
  0x53   :  { %577 = vmatpush3.bf16.msra.mxu0 %v576_v16 }
 0x109   :  { %v119_v10 = vpop.f32.mrb[0].mxu0 }
 0x10a   :  { %v120_v11 = vadd.f32 %v345_v9, %v119_v10  ;;  %v435_v12 = vpop.f32.mrb[1].mxu0 }
 0x10c   :  { %v123_v13 = vmax.f32 %v120_v11, 0.0 }
 0x10e   :  { %469 = vmatmul.mubr.f32.vlgmr.msra.gmra.mrb[0].mxu1 %v123_v13 }
 0x1e1   :  { %v215_v18 = vpop.f32.mrb[0].mxu1 }
 0x1e2   :  { %v216_v19 = vadd.f32 %v347_v17, %v215_v18  ;;  %v470_v0 = vpop.f32.mrb[1].mxu1 }
 0x1e4   :  { %v219_v20 = vmax.f32 %v216_v19, 0.0 }
 0x1e6   :  { %504 = vmatmul.mubr.f32.vlgmr.msra.gmra.mrb[2].mxu0 %v219_v20 }
 0x2b9   :  { %v311_v24 = vpop.f32.mrb[2].mxu0 }
 0x2ba   :  { %v312_v25 = vadd.f32 %v349_v23, %v311_v24  ;;  %v505_v26 = vpop.f32.mrb[3].mxu0 }
 0x2bc   :  { %v318_v27 = vsel %vm317_vm1, %v312_v25, -1e+30 }
 0x2bd   :  { %319 = vmax.xlane.f32.xlu0 %v318_v27 }
 0x34a   :  { %v320_v28 = vpop.xlane.xlu0 %319 }
 0x34b   :  { %v321_v29 = vsub.f32 %v318_v27, %v320_v28 }
 0x34d   :  { %v322_v30 = vmul.f32 1.442695, %v321_v29 }
 0x34f   :  { %585 = vpow2.f32 %v322_v30 }
 0x359   :  { %v586_v31 = vpop.eup %585 }
 0x35a   :  { %324 = vadd.xlane.f32.xlu0 %v586_v31 }
 0x3e7   :  { %v325_v32 = vpop.xlane.xlu0 %324 }
 0x3e8   :  { %587 = vlog2.f32 %v325_v32 }
 0x3f2   :  { %v588_v33 = vpop.eup %587 }
 0x3f3   :  { %v327_v34 = vmul.f32 0.6931472, %v588_v33 }
 0x3f5   :  { %v328_v35 = vsub.f32 %v321_v29, %v327_v34 }
 0x3f7   :  { %329 = vst [vmem:[#allocation5] sm:$0xff] %v328_v35 }
 0x3f8   :  { %622 = shalt.err (!%p619_p12)
}
 0x3f9   :  { %s623_s9 = scalar_lea.hbm %s733_s3, 128 }
 0x3fa   :  { %p624_p13 = scmp.ne.s32.totalorder %s733_s3, %s623_s9  ;;  %p627_p0 = scmp.lt.u32.totalorder %s623_s9, %s733_s3 }
 0x3fc   :  { %p629_p1 = pnand %p627_p0, %p624_p13 }
 0x3fe   :  { %632 = shalt.err (!%p629_p1)
}
 0x3ff   :  { %339 = dma.vmem_to_hbm [thread:$0]  %s337_s6, 128, %s733_s3, [#allocation4]  }
 0x400   :  { %635 = dma.done.wait [#allocation4], 128  }
 0x401   :  { %636 = vsyncadd [#allocation4], 4294967168 }
 0x402   :  { %343 = vsyncpa [#allocation3], 1 }
 0x403   :  { %344 = vsyncpa [#allocation4], 1 }

</bundles_post_ra>
